<compile_context>
chip_gen: v7x
topology: tpu7x:2x2x1
jax: 0.10.0
libtpu: 0.0.40
codegen_flags: <defaults>
</compile_context>

<pallas_src>
import jax
import jax.numpy as jnp
from jax.experimental import pallas as pl
from jax.experimental.pallas import tpu as pltpu

_OUT_PAD = 128  # pad final layer (2 logits) to a lane-dense width


def _mlp_kernel(x_ref, w1_ref, b1_ref, w2_ref, b2_ref, w3_ref, b3_ref,
                w4_ref, b4_ref, o_ref):
    # bf16 operands on the MXU, f32 accumulation, f32 elementwise.
    x = x_ref[...].astype(jnp.bfloat16)

    h1 = jnp.dot(x, w1_ref[...], preferred_element_type=jnp.float32) + b1_ref[...]
    h1 = jnp.maximum(h1, 0.0)                       # ReLU (Dropout = identity in eval)

    h2 = jnp.dot(h1.astype(jnp.bfloat16), w2_ref[...],
                 preferred_element_type=jnp.float32) + b2_ref[...]
    h2 = jnp.maximum(h2, 0.0)

    h3 = jnp.dot(h2.astype(jnp.bfloat16), w3_ref[...],
                 preferred_element_type=jnp.float32) + b3_ref[...]
    h3 = jnp.maximum(h3, 0.0)

    logits = jnp.dot(h3.astype(jnp.bfloat16), w4_ref[...],
                     preferred_element_type=jnp.float32) + b4_ref[...]
    o_ref[...] = jax.nn.sigmoid(logits)             # lane-dense (TB, 128) store


def mlp_unsw_forward(x, params, *, tb=1024):
    """x: (B, 42) f32. params: dict of w1..w4, b1..b4 (biases shaped (1, out))."""
    B, F = x.shape
    assert F == 42

    # Batch tile: multiple of 8, no bigger than the (rounded-up) batch.
    b8 = ((B + 7) // 8) * 8
    TB = min(tb, b8)
    B_pad = ((B + TB - 1) // TB) * TB
    if B_pad != B:
        x = jnp.pad(x, ((0, B_pad - B), (0, 0)))

    # Pre-cast matmul operands to bf16; keep biases f32 for f32 bias-add.
    w1 = params["w1"].astype(jnp.bfloat16)
    w2 = params["w2"].astype(jnp.bfloat16)
    w3 = params["w3"].astype(jnp.bfloat16)
    # Pad final layer 2 -> 128 output columns so the output store is lane-dense.
    pad4 = _OUT_PAD - params["w4"].shape[1]
    w4 = jnp.pad(params["w4"], ((0, 0), (0, pad4))).astype(jnp.bfloat16)
    b4 = jnp.pad(params["b4"], ((0, 0), (0, pad4)))

    grid = (B_pad // TB,)
    x_spec = pl.BlockSpec((TB, 42), lambda i: (i, 0))
    out_spec = pl.BlockSpec((TB, _OUT_PAD), lambda i: (i, 0))

    def const_spec(shape):
        # Weights/biases: same block every step -> stay VMEM-resident.
        return pl.BlockSpec(shape, lambda i: (0, 0))

    mm_flops = 2 * (42 * 128 + 128 * 96 + 96 * 64 + 64 * _OUT_PAD)
    weight_bytes = (42 * 128 + 128 * 96 + 96 * 64 + 64 * _OUT_PAD) * 2 \
                   + (128 + 96 + 64 + _OUT_PAD) * 4
    cost = pl.CostEstimate(
        flops=B_pad * mm_flops,
        transcendentals=B_pad * _OUT_PAD,                     # sigmoid
        bytes_accessed=B_pad * 42 * 4 + B_pad * _OUT_PAD * 4 + weight_bytes,
    )

    out = pl.pallas_call(
        _mlp_kernel,
        out_shape=jax.ShapeDtypeStruct((B_pad, _OUT_PAD), jnp.float32),
        grid=grid,
        in_specs=[
            x_spec,
            const_spec((42, 128)), const_spec((1, 128)),
            const_spec((128, 96)), const_spec((1, 96)),
            const_spec((96, 64)), const_spec((1, 64)),
            const_spec((64, _OUT_PAD)), const_spec((1, _OUT_PAD)),
        ],
        out_specs=out_spec,
        compiler_params=pltpu.CompilerParams(
            dimension_semantics=("parallel",)),
        cost_estimate=cost,
    )(x, w1, params["b1"], w2, params["b2"], w3, params["b3"], w4, b4)

    return out[:B, :2]


def init_params(key):
    """Deterministic init mimicking PyTorch Linear default (uniform +/- 1/sqrt(fan_in))."""
    dims = [(42, 128), (128, 96), (96, 64), (64, 2)]
    params = {}
    for i, (fan_in, fan_out) in enumerate(dims, start=1):
        key, kw, kb = jax.random.split(key, 3)
        bound = 1.0 / jnp.sqrt(fan_in)
        params[f"w{i}"] = jax.random.uniform(
            kw, (fan_in, fan_out), jnp.float32, minval=-bound, maxval=bound)
        # keep biases 2D (1, out) so in-kernel broadcast stays lane-aligned
        params[f"b{i}"] = jax.random.uniform(
            kb, (1, fan_out), jnp.float32, minval=-bound, maxval=bound)
    return params


def reference_forward(x, params):
    h = jnp.maximum(x @ params["w1"] + params["b1"], 0.0)
    h = jnp.maximum(h @ params["w2"] + params["b2"], 0.0)
    h = jnp.maximum(h @ params["w3"] + params["b3"], 0.0)
    return jax.nn.sigmoid(h @ params["w4"] + params["b4"])


if __name__ == "__main__":
    key = jax.random.PRNGKey(0)
    key, kx = jax.random.split(key)

    B = 8                                  # small demo batch
    x = jax.random.normal(kx, (B, 42), dtype=jnp.float32)
    params = init_params(key)

    out = mlp_unsw_forward(x, params)
    out = jax.block_until_ready(out)

    ref = reference_forward(x, params)
    assert out.shape == (B, 2)
    # bf16 matmul operands (f32 accumulate) -> relaxed tolerance vs f32 reference.
    assert jnp.allclose(out, ref, atol=2e-2, rtol=2e-2), "mismatch vs reference"

    print("KERNEL_OK")
</pallas_src>

<mosaic_0001>
module attributes {stable_mosaic.version = 11 : i64} {
  func.func @_mlp_kernel(%arg0: i32, %arg1: memref<8x42xf32, #tpu.memory_space<vmem>>, %arg2: memref<42x128xbf16, #tpu.memory_space<vmem>>, %arg3: memref<1x128xf32, #tpu.memory_space<vmem>>, %arg4: memref<128x96xbf16, #tpu.memory_space<vmem>>, %arg5: memref<1x96xf32, #tpu.memory_space<vmem>>, %arg6: memref<96x64xbf16, #tpu.memory_space<vmem>>, %arg7: memref<1x64xf32, #tpu.memory_space<vmem>>, %arg8: memref<64x128xbf16, #tpu.memory_space<vmem>>, %arg9: memref<1x128xf32, #tpu.memory_space<vmem>>, %arg10: memref<8x128xf32, #tpu.memory_space<vmem>>) attributes {dimension_semantics = [#tpu.dimension_semantics<parallel>], iteration_bounds = array<i64: 1>, scalar_prefetch = 0 : i64, scratch_operands = 0 : i64, tpu.core_type = #tpu.core_type<tc>, window_params = [{transform_indices = @transform_0, window_bounds = array<i64: 8, 42>}, {pipeline_mode = #tpu.pipeline_mode<synchronous>, transform_indices = @transform_1, window_bounds = array<i64: 42, 128>}, {pipeline_mode = #tpu.pipeline_mode<synchronous>, transform_indices = @transform_2, window_bounds = array<i64: 1, 128>}, {pipeline_mode = #tpu.pipeline_mode<synchronous>, transform_indices = @transform_3, window_bounds = array<i64: 128, 96>}, {pipeline_mode = #tpu.pipeline_mode<synchronous>, transform_indices = @transform_4, window_bounds = array<i64: 1, 96>}, {pipeline_mode = #tpu.pipeline_mode<synchronous>, transform_indices = @transform_5, window_bounds = array<i64: 96, 64>}, {pipeline_mode = #tpu.pipeline_mode<synchronous>, transform_indices = @transform_6, window_bounds = array<i64: 1, 64>}, {pipeline_mode = #tpu.pipeline_mode<synchronous>, transform_indices = @transform_7, window_bounds = array<i64: 64, 128>}, {pipeline_mode = #tpu.pipeline_mode<synchronous>, transform_indices = @transform_8, window_bounds = array<i64: 1, 128>}, {transform_indices = @transform_9, window_bounds = array<i64: 8, 128>}]} {
    %c0 = arith.constant 0 : index
    %c0_0 = arith.constant 0 : index
    %0 = vector.load %arg1[%c0, %c0_0] : memref<8x42xf32, #tpu.memory_space<vmem>>, vector<8x42xf32>
    %1 = arith.truncf %0 : vector<8x42xf32> to vector<8x42xbf16>
    %c0_1 = arith.constant 0 : index
    %c0_2 = arith.constant 0 : index
    %2 = vector.load %arg2[%c0_1, %c0_2] : memref<42x128xbf16, #tpu.memory_space<vmem>>, vector<42x128xbf16>
    %cst = arith.constant dense<0.000000e+00> : vector<8x128xf32>
    %3 = tpu.matmul %1, %2, %cst {dimension_numbers = #tpu.dot_dimension_numbers<[1], [0], [0], [1], [0, 0, 1, 1], [], []>} : vector<8x42xbf16>, vector<42x128xbf16>, vector<8x128xf32> -> vector<8x128xf32>
    %c0_3 = arith.constant 0 : index
    %c0_4 = arith.constant 0 : index
    %4 = vector.load %arg3[%c0_3, %c0_4] : memref<1x128xf32, #tpu.memory_space<vmem>>, vector<1x128xf32>
    %5 = vector.broadcast %4 : vector<1x128xf32> to vector<8x128xf32>
    %6 = arith.addf %3, %5 : vector<8x128xf32>
    %cst_5 = arith.constant 0.000000e+00 : f32
    %7 = vector.broadcast %cst_5 : f32 to vector<8x128xf32>
    %8 = arith.maximumf %6, %7 : vector<8x128xf32>
    %9 = arith.truncf %8 : vector<8x128xf32> to vector<8x128xbf16>
    %c0_6 = arith.constant 0 : index
    %c0_7 = arith.constant 0 : index
    %10 = vector.load %arg4[%c0_6, %c0_7] : memref<128x96xbf16, #tpu.memory_space<vmem>>, vector<128x96xbf16>
    %cst_8 = arith.constant dense<0.000000e+00> : vector<8x96xf32>
    %11 = tpu.matmul %9, %10, %cst_8 {dimension_numbers = #tpu.dot_dimension_numbers<[1], [0], [0], [1], [0, 0, 1, 1], [], []>} : vector<8x128xbf16>, vector<128x96xbf16>, vector<8x96xf32> -> vector<8x96xf32>
    %c0_9 = arith.constant 0 : index
    %c0_10 = arith.constant 0 : index
    %12 = vector.load %arg5[%c0_9, %c0_10] : memref<1x96xf32, #tpu.memory_space<vmem>>, vector<1x96xf32>
    %13 = vector.broadcast %12 : vector<1x96xf32> to vector<8x96xf32>
    %14 = arith.addf %11, %13 : vector<8x96xf32>
    %cst_11 = arith.constant 0.000000e+00 : f32
    %15 = vector.broadcast %cst_11 : f32 to vector<8x96xf32>
    %16 = arith.maximumf %14, %15 : vector<8x96xf32>
    %17 = arith.truncf %16 : vector<8x96xf32> to vector<8x96xbf16>
    %c0_12 = arith.constant 0 : index
    %c0_13 = arith.constant 0 : index
    %18 = vector.load %arg6[%c0_12, %c0_13] : memref<96x64xbf16, #tpu.memory_space<vmem>>, vector<96x64xbf16>
    %cst_14 = arith.constant dense<0.000000e+00> : vector<8x64xf32>
    %19 = tpu.matmul %17, %18, %cst_14 {dimension_numbers = #tpu.dot_dimension_numbers<[1], [0], [0], [1], [0, 0, 1, 1], [], []>} : vector<8x96xbf16>, vector<96x64xbf16>, vector<8x64xf32> -> vector<8x64xf32>
    %c0_15 = arith.constant 0 : index
    %c0_16 = arith.constant 0 : index
    %20 = vector.load %arg7[%c0_15, %c0_16] : memref<1x64xf32, #tpu.memory_space<vmem>>, vector<1x64xf32>
    %21 = vector.broadcast %20 : vector<1x64xf32> to vector<8x64xf32>
    %22 = arith.addf %19, %21 : vector<8x64xf32>
    %cst_17 = arith.constant 0.000000e+00 : f32
    %23 = vector.broadcast %cst_17 : f32 to vector<8x64xf32>
    %24 = arith.maximumf %22, %23 : vector<8x64xf32>
    %25 = arith.truncf %24 : vector<8x64xf32> to vector<8x64xbf16>
    %c0_18 = arith.constant 0 : index
    %c0_19 = arith.constant 0 : index
    %26 = vector.load %arg8[%c0_18, %c0_19] : memref<64x128xbf16, #tpu.memory_space<vmem>>, vector<64x128xbf16>
    %cst_20 = arith.constant dense<0.000000e+00> : vector<8x128xf32>
    %27 = tpu.matmul %25, %26, %cst_20 {dimension_numbers = #tpu.dot_dimension_numbers<[1], [0], [0], [1], [0, 0, 1, 1], [], []>} : vector<8x64xbf16>, vector<64x128xbf16>, vector<8x128xf32> -> vector<8x128xf32>
    %c0_21 = arith.constant 0 : index
    %c0_22 = arith.constant 0 : index
    %28 = vector.load %arg9[%c0_21, %c0_22] : memref<1x128xf32, #tpu.memory_space<vmem>>, vector<1x128xf32>
    %29 = vector.broadcast %28 : vector<1x128xf32> to vector<8x128xf32>
    %30 = arith.addf %27, %29 : vector<8x128xf32>
    %31 = arith.negf %30 : vector<8x128xf32>
    %32 = math.exp %31 : vector<8x128xf32>
    %cst_23 = arith.constant 1.000000e+00 : f32
    %33 = vector.broadcast %cst_23 : f32 to vector<8x128xf32>
    %34 = arith.addf %33, %32 : vector<8x128xf32>
    %35 = arith.divf %33, %34 : vector<8x128xf32>
    %c0_24 = arith.constant 0 : index
    %c0_25 = arith.constant 0 : index
    %36 = vector.load %arg10[%c0_24, %c0_25] : memref<8x128xf32, #tpu.memory_space<vmem>>, vector<8x128xf32>
    tpu.vector_store %arg10[%c0_24, %c0_25], %35 {strides = array<i32>} : memref<8x128xf32, #tpu.memory_space<vmem>>, vector<8x128xf32>,
    return
  }
  func.func @transform_0(%arg0: i32) -> (i32, i32) {
    %c0_i32 = arith.constant 0 : i32
    %c0_i32_0 = arith.constant 0 : i32
    return %arg0, %c0_i32 : i32, i32
  }
  func.func @transform_1(%arg0: i32) -> (i32, i32) {
    %c0_i32 = arith.constant 0 : i32
    %c0_i32_0 = arith.constant 0 : i32
    %c0_i32_1 = arith.constant 0 : i32
    return %c0_i32, %c0_i32_0 : i32, i32
  }
  func.func @transform_2(%arg0: i32) -> (i32, i32) {
    %c0_i32 = arith.constant 0 : i32
    %c0_i32_0 = arith.constant 0 : i32
    %c0_i32_1 = arith.constant 0 : i32
    return %c0_i32, %c0_i32_0 : i32, i32
  }
  func.func @transform_3(%arg0: i32) -> (i32, i32) {
    %c0_i32 = arith.constant 0 : i32
    %c0_i32_0 = arith.constant 0 : i32
    %c0_i32_1 = arith.constant 0 : i32
    return %c0_i32, %c0_i32_0 : i32, i32
  }
  func.func @transform_4(%arg0: i32) -> (i32, i32) {
    %c0_i32 = arith.constant 0 : i32
    %c0_i32_0 = arith.constant 0 : i32
    %c0_i32_1 = arith.constant 0 : i32
    return %c0_i32, %c0_i32_0 : i32, i32
  }
  func.func @transform_5(%arg0: i32) -> (i32, i32) {
    %c0_i32 = arith.constant 0 : i32
    %c0_i32_0 = arith.constant 0 : i32
    %c0_i32_1 = arith.constant 0 : i32
    return %c0_i32, %c0_i32_0 : i32, i32
  }
  func.func @transform_6(%arg0: i32) -> (i32, i32) {
    %c0_i32 = arith.constant 0 : i32
    %c0_i32_0 = arith.constant 0 : i32
    %c0_i32_1 = arith.constant 0 : i32
    return %c0_i32, %c0_i32_0 : i32, i32
  }
  func.func @transform_7(%arg0: i32) -> (i32, i32) {
    %c0_i32 = arith.constant 0 : i32
    %c0_i32_0 = arith.constant 0 : i32
    %c0_i32_1 = arith.constant 0 : i32
    return %c0_i32, %c0_i32_0 : i32, i32
  }
  func.func @transform_8(%arg0: i32) -> (i32, i32) {
    %c0_i32 = arith.constant 0 : i32
    %c0_i32_0 = arith.constant 0 : i32
    %c0_i32_1 = arith.constant 0 : i32
    return %c0_i32, %c0_i32_0 : i32, i32
  }
  func.func @transform_9(%arg0: i32) -> (i32, i32) {
    %c0_i32 = arith.constant 0 : i32
    %c0_i32_0 = arith.constant 0 : i32
    return %arg0, %c0_i32 : i32, i32
  }
}

</mosaic_0001>

<bundles_post_ra>
// kernel: tpu_custom_call.1
= control target key start
LH: loop header
LB: loop body
LE: loop exit
PB: predicated region body
PF: predicated region fallthrough
CT: control target
= control target key end

     0   :  { %v598_v1 = vmov 0.0   ;;  %vm70_vm0 = vcmask 1044480   ;;  %vm599_vm1 = vmmov 0   ;;  %vm66_vm2 = vcmask 343040   ;;  %s770_s0 = inlined_call_operand.vmem [shape: f32[8,42], index: 0, kind: input, shape index: {}]   ;;  %s771_s1 = inlined_call_operand.vmem [shape: bf16[42,128], index: 1, kind: input, shape index: {}]   ;;  %s772_s2 = inlined_call_operand.vmem [shape: f32[1,128], index: 2, kind: input, shape index: {}]   ;;  %s773_s3 = inlined_call_operand.vmem [shape: bf16[128,96], index: 3, kind: input, shape index: {}]   ;;  %s774_s4 = inlined_call_operand.vmem [shape: f32[1,96], index: 4, kind: input, shape index: {}]   ;;  %s775_s5 = inlined_call_operand.vmem [shape: bf16[96,64], index: 5, kind: input, shape index: {}]   ;;  %s776_s6 = inlined_call_operand.vmem [shape: f32[1,64], index: 6, kind: input, shape index: {}]   ;;  %s777_s7 = inlined_call_operand.vmem [shape: bf16[64,128], index: 7, kind: input, shape index: {}]   ;;  %s778_s8 = inlined_call_operand.vmem [shape: f32[1,128], index: 8, kind: input, shape index: {}]   ;;  %s779_s9 = inlined_call_operand.hbm [shape: f32[8,128], index: 9, kind: output, shape index: {}]  }
   0x1   :  { %v549_v0 = vld [vmem:[%s771_s1] sm:$0xff]   ;;  %488 = vmatprep.subr.bf16.mxu0 %v598_v1  ;;  %498 = vmatprep.subr.bf16.mxu1 %v598_v1  ;;  %v550_v2 = vld [vmem:[%s771_s1 + $0x8] sm:$0xff]   ;;  %v551_v3 = vld [vmem:[%s771_s1 + $0x10] sm:$0x1f]  }
   0x2   :  { %489 = vmatpush3.bf16.msra.mxu0 %v549_v0  ;;  %v552_v4 = vld [vmem:[%s773_s3] sm:$0xff]   ;;  %494 = vmatprep.mubr.msk.bf16.mxu0 %vm599_vm1, %v598_v1  ;;  %v553_v5 = vld [vmem:[%s773_s3 + $0x8] sm:$0xff]   ;;  %v72_v7 = vsel %vm70_vm0, %v551_v3, 0  ;;  %v554_v9 = vld [vmem:[%s773_s3 + $0x10] sm:$0xff]  }
   0x3   :  { %490 = vmatprep.subr.bf16.mxu0 %v598_v1  ;;  %514 = vmatprep.mubr.msk.bf16.mxu1 %vm599_vm1, %v598_v1  ;;  %v34_v6 = vld [vmem:[%s770_s0] sm:$0xff]  ;;  %v555_v10 = vld [vmem:[%s773_s3 + $0x18] sm:$0xff]  }
   0x4   :  { %499 = vmatpush3.bf16.msra.mxu1 %v552_v4  ;;  %v35_v8 = vpack.c.bf16 %v34_v6, %v34_v6  ;;  %v556_v11 = vld [vmem:[%s773_s3 + $0x20] sm:$0xff]  }
   0x5   :  { %500 = vmatprep.subr.bf16.mxu1 %v598_v1 }
   0x6   :  { %491 = vmatpush3.bf16.msra.mxu0 %v550_v2 }
   0x7   :  { %492 = vmatprep.subr.bf16.mxu0 %v598_v1 }
   0x8   :  { %501 = vmatpush3.bf16.msra.mxu1 %v553_v5 }
   0x9   :  { %502 = vmatprep.subr.bf16.mxu1 %v598_v1 }
   0xa   :  { %493 = vmatpush3.bf16.msra.mxu0 %v72_v7 }
   0xb   :  { %518 = vmatprep.subr.bf16.mxu0 %v598_v1 }
   0xc   :  { %503 = vmatpush3.bf16.msra.mxu1 %v554_v9 }
   0xd   :  { %495 = vmatmul.mubr.msk.bf16.vlgmr.msra.gmra.mrb[0].mxu0 %vm66_vm2, %v35_v8  ;;  %504 = vmatprep.subr.bf16.mxu1 %v598_v1 }
   0xe   :  { %530 = vmatprep.mubr.msk.bf16.mxu0 %vm599_vm1, %v598_v1 }
  0x10   :  { %505 = vmatpush3.bf16.msra.mxu1 %v555_v10 }
  0x11   :  { %14 = vsyncpa [#allocation3], 0  ;;  %506 = vmatprep.subr.bf16.mxu1 %v598_v1  ;;  %v557_v12 = vld [vmem:[%s773_s3 + $0x28] sm:$0xff]   ;;  %v558_v13 = vld [vmem:[%s773_s3 + $0x30] sm:$0xff]   ;;  %vm284_vm3 = vcmask 785408   ;;  %vm369_vm4 = vcmask 523264  }
  0x12   :  { %v559_v14 = vld [vmem:[%s773_s3 + $0x38] sm:$0xff]   ;;  %v560_v15 = vld [vmem:[%s775_s5] sm:$0xff]   ;;  %v561_v16 = vld [vmem:[%s775_s5 + $0x8] sm:$0xff]  }
  0x13   :  { %519 = vmatpush3.bf16.msra.mxu0 %v560_v15  ;;  %v562_v17 = vld [vmem:[%s775_s5 + $0x10] sm:$0xff]   ;;  %v563_v18 = vld [vmem:[%s775_s5 + $0x18] sm:$0xff]   ;;  %v434_v19 = vld [vmem:[%s772_s2] ss:$0 sm:$0xff] }
  0x14   :  { %507 = vmatpush3.bf16.msra.mxu1 %v556_v11  ;;  %520 = vmatprep.subr.bf16.mxu0 %v598_v1  ;;  %v564_v27 = vld [vmem:[%s775_s5 + $0x20] sm:$0xff]   ;;  %v565_v28 = vld [vmem:[%s775_s5 + $0x28] sm:$0xff]   ;;  %v568_v39 = vld [vmem:[%s777_s7 + $0x10] sm:$0xff]  }
  0x15   :  { %508 = vmatprep.subr.bf16.mxu1 %v598_v1  ;;  %v566_v29 = vld [vmem:[%s777_s7] sm:$0xff]   ;;  %v567_v30 = vld [vmem:[%s777_s7 + $0x8] sm:$0xff]   ;;  %v569_v40 = vld [vmem:[%s777_s7 + $0x18] sm:$0xff]  }
  0x16   :  { %v439_v31 = vld [vmem:[%s774_s4] ss:$0 sm:$0xff] }
  0x17   :  { %521 = vmatpush3.bf16.msra.mxu0 %v561_v16  ;;  %v448_v41 = vld [vmem:[%s776_s6] ss:$0 sm:$0xff]  ;;  %s600_s6 = smov [#allocation2]  }
  0x18   :  { %509 = vmatpush3.bf16.msra.mxu1 %v557_v12  ;;  %522 = vmatprep.subr.bf16.mxu0 %v598_v1  ;;  %v456_v49 = vld [vmem:[%s778_s8] ss:$0 sm:$0xff]  ;;  %s426_s7 = sshll.u32 %s600_s6, 4  ;;  %s427_s7 = int_to_ptr.vmem [resolvable:$true] %s426_s7 }
  0x19   :  { %510 = vmatprep.subr.bf16.mxu1 %v598_v1  ;;  %s574_s11 = scalar_lea.vmem %s427_s7, 128  ;;  %p579_p1 = scmp.lt.s32.totalorder %s427_s7, %s427_s7 }
  0x1a   :  { %p575_p0 = scmp.ne.s32.totalorder %s427_s7, %s574_s11  ;;  %p580_p2 = scmp.lt.s32.totalorder %s574_s11, %s574_s11 }
  0x1b   :  { %523 = vmatpush3.bf16.msra.mxu0 %v562_v17 }
  0x1c   :  { %511 = vmatpush3.bf16.msra.mxu1 %v558_v13  ;;  %524 = vmatprep.subr.bf16.mxu0 %v598_v1  ;;  %p581_p3 = por %p580_p2, %p579_p1 }
  0x1d   :  { %512 = vmatprep.subr.bf16.mxu1 %v598_v1 }
  0x1e   :  { %p582_p4 = pnand %p581_p3, %p575_p0 }
  0x1f   :  { %525 = vmatpush3.bf16.msra.mxu0 %v563_v18 }
  0x20   :  { %513 = vmatpush3.bf16.msra.mxu1 %v559_v14  ;;  %526 = vmatprep.subr.bf16.mxu0 %v598_v1 }
  0x21   :  { %534 = vmatprep.subr.bf16.mxu1 %v598_v1 }
  0x23   :  { %527 = vmatpush3.bf16.msra.mxu0 %v564_v27 }
  0x24   :  { %528 = vmatprep.subr.bf16.mxu0 %v598_v1 }
  0x27   :  { %529 = vmatpush3.bf16.msra.mxu0 %v565_v28 }
  0xe0   :  { %v108_v20 = vpop.f32.mrb[0].mxu0 }
  0xe1   :  { %v109_v21 = vadd.f32 %v434_v19, %v108_v20  ;;  %v496_v22 = vpop.f32.mrb[1].mxu0 }
  0xe2   :  { %v111_v23 = vpop.f32.mrb[2].mxu0 }
  0xe3   :  { %v114_v24 = vmax.f32 %v109_v21, 0.0  ;;  %v497_v25 = vpop.f32.mrb[3].mxu0 }
  0xe5   :  { %v115_v26 = vpack.c.bf16 %v114_v24, %v114_v24 }
  0xe7   :  { %515 = vmatmul.mubr.bf16.vlgmr.msra.gmra.mrb[0].mxu1 %v115_v26 }
  0xe8   :  { %542 = vmatprep.mubr.msk.bf16.mxu1 %vm599_vm1, %v598_v1  ;;  %535 = vmatpush3.bf16.msra.mxu1 %v566_v29 }
  0xe9   :  { %536 = vmatprep.subr.bf16.mxu1 %v598_v1 }
  0xec   :  { %537 = vmatpush3.bf16.msra.mxu1 %v567_v30 }
  0xed   :  { %538 = vmatprep.subr.bf16.mxu1 %v598_v1 }
  0xf0   :  { %539 = vmatpush3.bf16.msra.mxu1 %v568_v39 }
  0xf1   :  { %540 = vmatprep.subr.bf16.mxu1 %v598_v1 }
  0xf4   :  { %541 = vmatpush3.bf16.msra.mxu1 %v569_v40 }
 0x1ba   :  { %v221_v32 = vpop.f32.mrb[0].mxu1 }
 0x1bb   :  { %v222_v33 = vadd.f32 %v439_v31, %v221_v32  ;;  %v516_v34 = vpop.f32.mrb[1].mxu1 }
 0x1bc   :  { %v224_v35 = vpop.f32.mrb[2].mxu1 }
 0x1bd   :  { %v227_v36 = vmax.f32 %v222_v33, 0.0  ;;  %v517_v37 = vpop.f32.mrb[3].mxu1 }
 0x1bf   :  { %v228_v38 = vpack.c.bf16 %v227_v36, %v227_v36 }
 0x1c1   :  { %531 = vmatmul.mubr.msk.bf16.vlgmr.msra.gmra.mrb[4].mxu0 %vm284_vm3, %v228_v38 }
 0x294   :  { %v322_v42 = vpop.f32.mrb[4].mxu0 }
 0x295   :  { %v323_v43 = vadd.f32 %v448_v41, %v322_v42  ;;  %v532_v44 = vpop.f32.mrb[5].mxu0 }
 0x296   :  { %v325_v45 = vpop.f32.mrb[6].mxu0 }
 0x297   :  { %v328_v46 = vmax.f32 %v323_v43, 0.0  ;;  %v533_v47 = vpop.f32.mrb[7].mxu0 }
 0x299   :  { %v329_v48 = vpack.c.bf16 %v328_v46, %v328_v46 }
 0x29b   :  { %543 = vmatmul.mubr.msk.bf16.vlgmr.msra.gmra.mrb[4].mxu1 %vm369_vm4, %v329_v48 }
 0x36e   :  { %v407_v50 = vpop.f32.mrb[4].mxu1 }
 0x36f   :  { %v408_v51 = vadd.f32 %v456_v49, %v407_v50  ;;  %v544_v52 = vpop.f32.mrb[5].mxu1 }
 0x370   :  { %v410_v53 = vpop.f32.mrb[6].mxu1 }
 0x371   :  { %v462_v54 = vmul.f32 -1.442695, %v408_v51  ;;  %v545_v55 = vpop.f32.mrb[7].mxu1 }
 0x373   :  { %570 = vpow2.f32 %v462_v54 }
 0x37d   :  { %v571_v56 = vpop.eup %570 }
 0x37e   :  { %v416_v57 = vadd.f32 1.0, %v571_v56 }
 0x380   :  { %572 = vrcp.f32 %v416_v57 }
 0x38a   :  { %v573_v58 = vpop.eup %572 }
 0x38b   :  { %419 = vst [vmem:[#allocation2] sm:$0xff] %v573_v58 }
 0x38c   :  { %585 = shalt.err (!%p582_p4)
}
 0x38d   :  { %s586_s13 = scalar_lea.hbm %s779_s9, 128 }
 0x38e   :  { %p587_p5 = scmp.ne.s32.totalorder %s779_s9, %s586_s13  ;;  %p590_p6 = scmp.lt.u32.totalorder %s586_s13, %s779_s9 }
 0x390   :  { %p592_p7 = pnand %p590_p6, %p587_p5 }
 0x392   :  { %595 = shalt.err (!%p592_p7)
}
 0x393   :  { %429 = dma.vmem_to_hbm [thread:$0]  %s427_s7, 128, %s779_s9, [#allocation3]  }
 0x394   :  { %596 = dma.done.wait [#allocation3], 128  }
 0x395   :  { %597 = vsyncadd [#allocation3], 4294967168 }
 0x396   :  { %433 = vsyncpa [#allocation3], 1 }

</bundles_post_ra>
